<compile_context>
chip_gen: v7x
topology: tpu7x:2x2x1
jax: 0.10.0
libtpu: 0.0.40
codegen_flags: <defaults>
</compile_context>

<pallas_src>
import jax
import jax.numpy as jnp
from jax.experimental import pallas as pl
from jax.experimental.pallas import tpu as pltpu


def _round_up(x, m):
    return (x + m - 1) // m * m


def _attention_kernel(h_ref, enc_ref, wh_ref, we_ref, b_ref, v_ref, o_ref):
    tb = h_ref.shape[0]          # batch-tile rows
    s = o_ref.shape[1]           # src_len (fully in-block -> softmax in-kernel)
    dd = wh_ref.shape[1]         # dec_hid_dim

    # Decoder-hidden projection: (TB, Dd) @ (Dd, Dd) + bias, f32 accumulate.
    h_proj = jnp.dot(h_ref[...], wh_ref[...],
                     preferred_element_type=jnp.float32) + b_ref[...]

    # Encoder projection: one lane-dense MXU matmul over all (b, s) rows of
    # the tile: (TB*S, E) @ (E, Dd).
    e_proj = jnp.dot(enc_ref[...], we_ref[...],
                     preferred_element_type=jnp.float32)

    # energy[b, s, :] = tanh(h_proj[b, :] + e_proj[b*S + s, :])
    # (reshape only splits the leading sublane dim; S is a multiple of 8 here
    #  so it is tile-aligned and free)
    energy = jnp.tanh(e_proj.reshape(tb, s, dd) + h_proj[:, None, :])

    # score[b, s] = <v, energy[b, s, :]>  -- VPU mul + XLU lane reduce,
    # avoiding an N=1 matmul that would waste MXU width.
    score = jnp.sum(energy * v_ref[...][None, :, :], axis=-1)   # (TB, S) f32

    # Row-wise softmax over src_len.
    m = jnp.max(score, axis=-1, keepdims=True)
    ex = jnp.exp(score - m)
    denom = jnp.sum(ex, axis=-1, keepdims=True)
    o_ref[...] = (ex / denom).astype(o_ref.dtype)


def attention_pallas(hidden, encoder_outputs, attn_w, attn_b, v_w, *, tb=128):
    """hidden: (B, Dd); encoder_outputs: (S, B, E=2*enc_hid);
       attn_w: (Dd, Dd+E); attn_b: (Dd,); v_w: (1, Dd).  Returns (B, S)."""
    S, B, E = encoder_outputs.shape
    Dd = hidden.shape[-1]
    assert attn_w.shape == (Dd, Dd + E)

    # Split the attn Linear by the torch.cat((hidden, enc), dim=2) ordering:
    #   y = hidden @ W[:, :Dd].T + enc @ W[:, Dd:].T + b
    wh = attn_w[:, :Dd].T               # (Dd, Dd)
    we = attn_w[:, Dd:].T               # (E, Dd)
    b2 = attn_b.reshape(1, Dd)
    v2 = v_w.reshape(1, Dd)

    # (S, B, E) -> (B, S, E) -> (B*S, E): kernel's main matmul is a single 2-D
    # lane-dense matmul; a batch tile of TB rows is TB*S contiguous rows here.
    enc = jnp.transpose(encoder_outputs, (1, 0, 2)).reshape(B * S, E)

    # Batch tile: multiple of 8 sublanes, padded batch if needed.
    tb = max(8, min(_round_up(tb, 8), _round_up(B, 8)))
    Bp = _round_up(B, tb)
    if Bp != B:
        hidden_p = jnp.zeros((Bp, Dd), hidden.dtype).at[:B].set(hidden)
        enc_p = jnp.zeros((Bp * S, E), enc.dtype).at[:B * S].set(enc)
    else:
        hidden_p, enc_p = hidden, enc

    grid = (Bp // tb,)

    cost = pl.CostEstimate(
        flops=int(2 * Bp * S * E * Dd + 2 * Bp * Dd * Dd + 2 * Bp * S * Dd),
        transcendentals=int(Bp * S * Dd + Bp * S),
        bytes_accessed=int(4 * (Bp * Dd + Bp * S * E + Dd * Dd + E * Dd
                                + 2 * Dd + Bp * S)),
    )

    out = pl.pallas_call(
        _attention_kernel,
        out_shape=jax.ShapeDtypeStruct((Bp, S), hidden.dtype),
        grid_spec=pltpu.PrefetchScalarGridSpec(
            num_scalar_prefetch=0,
            grid=grid,
            in_specs=[
                pl.BlockSpec((tb, Dd), lambda i: (i, 0)),        # hidden tile
                pl.BlockSpec((tb * S, E), lambda i: (i, 0)),     # encoder tile
                pl.BlockSpec((Dd, Dd), lambda i: (0, 0)),        # W_h (resident)
                pl.BlockSpec((E, Dd), lambda i: (0, 0)),         # W_e (resident)
                pl.BlockSpec((1, Dd), lambda i: (0, 0)),         # bias (resident)
                pl.BlockSpec((1, Dd), lambda i: (0, 0)),         # v    (resident)
            ],
            out_specs=pl.BlockSpec((tb, S), lambda i: (i, 0)),
        ),
        compiler_params=pltpu.CompilerParams(
            dimension_semantics=("parallel",),
            vmem_limit_bytes=32 * 1024 * 1024,
        ),
        cost_estimate=cost,
    )(hidden_p, enc_p, wh, we, b2, v2)

    return out[:B]


if __name__ == "__main__":
    # Module config: Attention(enc_hid_dim=16, dec_hid_dim=32); src_len=8, batch=16.
    enc_hid_dim, dec_hid_dim = 16, 32
    src_len, batch = 8, 16
    E = 2 * enc_hid_dim
    Dd = dec_hid_dim

    key = jax.random.PRNGKey(0)
    kh, ke, kw, kb, kv = jax.random.split(key, 5)

    # nn.Linear-style U(-1/sqrt(fan_in), 1/sqrt(fan_in)) init.
    ba = 1.0 / ((Dd + E) ** 0.5)
    attn_w = jax.random.uniform(kw, (Dd, Dd + E), minval=-ba, maxval=ba,
                                dtype=jnp.float32)
    attn_b = jax.random.uniform(kb, (Dd,), minval=-ba, maxval=ba,
                                dtype=jnp.float32)
    bv = 1.0 / (Dd ** 0.5)
    v_w = jax.random.uniform(kv, (1, Dd), minval=-bv, maxval=bv,
                             dtype=jnp.float32)

    hidden = jax.random.normal(kh, (batch, Dd), dtype=jnp.float32)
    encoder_outputs = jax.random.normal(ke, (src_len, batch, E),
                                        dtype=jnp.float32)

    # tb=8 -> grid=(2,): exercises batch tiling / pipelining even at demo size.
    out = attention_pallas(hidden, encoder_outputs, attn_w, attn_b, v_w, tb=8)
    out = jax.block_until_ready(out)

    # Pure-JAX reference of the PyTorch forward.
    hidden_rep = jnp.broadcast_to(hidden[:, None, :], (batch, src_len, Dd))
    enc_bse = jnp.transpose(encoder_outputs, (1, 0, 2))
    cat = jnp.concatenate([hidden_rep, enc_bse], axis=-1)
    energy = jnp.tanh(cat @ attn_w.T + attn_b)
    scores = (energy @ v_w.T)[..., 0]
    ref = jax.nn.softmax(scores, axis=1)

    assert out.shape == (batch, src_len)
    assert jnp.allclose(jnp.sum(out, axis=1), 1.0, atol=1e-5)
    assert jnp.allclose(out, ref, atol=1e-5, rtol=1e-4)
    print("KERNEL_OK")
</pallas_src>

<mosaic_0001>
module attributes {stable_mosaic.version = 11 : i64} {
  func.func @_attention_kernel(%arg0: i32, %arg1: memref<8x32xf32, #tpu.memory_space<vmem>>, %arg2: memref<64x32xf32, #tpu.memory_space<vmem>>, %arg3: memref<32x32xf32, #tpu.memory_space<vmem>>, %arg4: memref<32x32xf32, #tpu.memory_space<vmem>>, %arg5: memref<1x32xf32, #tpu.memory_space<vmem>>, %arg6: memref<1x32xf32, #tpu.memory_space<vmem>>, %arg7: memref<8x8xf32, #tpu.memory_space<vmem>>) attributes {dimension_semantics = [#tpu.dimension_semantics<parallel>], iteration_bounds = array<i64: 2>, scalar_prefetch = 0 : i64, scratch_operands = 0 : i64, tpu.core_type = #tpu.core_type<tc>, window_params = [{transform_indices = @transform_0, window_bounds = array<i64: 8, 32>}, {transform_indices = @transform_1, window_bounds = array<i64: 64, 32>}, {pipeline_mode = #tpu.pipeline_mode<synchronous>, transform_indices = @transform_2, window_bounds = array<i64: 32, 32>}, {pipeline_mode = #tpu.pipeline_mode<synchronous>, transform_indices = @transform_3, window_bounds = array<i64: 32, 32>}, {pipeline_mode = #tpu.pipeline_mode<synchronous>, transform_indices = @transform_4, window_bounds = array<i64: 1, 32>}, {pipeline_mode = #tpu.pipeline_mode<synchronous>, transform_indices = @transform_5, window_bounds = array<i64: 1, 32>}, {transform_indices = @transform_6, window_bounds = array<i64: 8, 8>}]} {
    %c0 = arith.constant 0 : index
    %c0_0 = arith.constant 0 : index
    %0 = vector.load %arg1[%c0, %c0_0] : memref<8x32xf32, #tpu.memory_space<vmem>>, vector<8x32xf32>
    %c0_1 = arith.constant 0 : index
    %c0_2 = arith.constant 0 : index
    %1 = vector.load %arg3[%c0_1, %c0_2] : memref<32x32xf32, #tpu.memory_space<vmem>>, vector<32x32xf32>
    %cst = arith.constant dense<0.000000e+00> : vector<8x32xf32>
    %2 = tpu.matmul %0, %1, %cst {dimension_numbers = #tpu.dot_dimension_numbers<[1], [0], [0], [1], [0, 0, 1, 1], [], []>} : vector<8x32xf32>, vector<32x32xf32>, vector<8x32xf32> -> vector<8x32xf32>
    %c0_3 = arith.constant 0 : index
    %c0_4 = arith.constant 0 : index
    %3 = vector.load %arg5[%c0_3, %c0_4] : memref<1x32xf32, #tpu.memory_space<vmem>>, vector<1x32xf32>
    %4 = vector.broadcast %3 : vector<1x32xf32> to vector<8x32xf32>
    %5 = arith.addf %2, %4 : vector<8x32xf32>
    %c0_5 = arith.constant 0 : index
    %c0_6 = arith.constant 0 : index
    %6 = vector.load %arg2[%c0_5, %c0_6] : memref<64x32xf32, #tpu.memory_space<vmem>>, vector<64x32xf32>
    %c0_7 = arith.constant 0 : index
    %c0_8 = arith.constant 0 : index
    %7 = vector.load %arg4[%c0_7, %c0_8] : memref<32x32xf32, #tpu.memory_space<vmem>>, vector<32x32xf32>
    %cst_9 = arith.constant dense<0.000000e+00> : vector<64x32xf32>
    %8 = tpu.matmul %6, %7, %cst_9 {dimension_numbers = #tpu.dot_dimension_numbers<[1], [0], [0], [1], [0, 0, 1, 1], [], []>} : vector<64x32xf32>, vector<32x32xf32>, vector<64x32xf32> -> vector<64x32xf32>
    %9 = vector.shape_cast %8 : vector<64x32xf32> to vector<8x8x32xf32>
    %10 = vector.shape_cast %5 : vector<8x32xf32> to vector<8x1x32xf32>
    %11 = vector.broadcast %10 : vector<8x1x32xf32> to vector<8x8x32xf32>
    %12 = arith.addf %9, %11 : vector<8x8x32xf32>
    %13 = math.tanh %12 : vector<8x8x32xf32>
    %c0_10 = arith.constant 0 : index
    %c0_11 = arith.constant 0 : index
    %14 = vector.load %arg6[%c0_10, %c0_11] : memref<1x32xf32, #tpu.memory_space<vmem>>, vector<1x32xf32>
    %15 = vector.shape_cast %14 : vector<1x32xf32> to vector<1x1x32xf32>
    %16 = vector.broadcast %15 : vector<1x1x32xf32> to vector<8x8x32xf32>
    %17 = arith.mulf %13, %16 : vector<8x8x32xf32>
    %cst_12 = arith.constant dense<0.000000e+00> : vector<8x8xf32>
    %18 = vector.multi_reduction <add>, %17, %cst_12 [2] : vector<8x8x32xf32> to vector<8x8xf32>
    %cst_13 = arith.constant dense<0xFF800000> : vector<8xf32>
    %19 = vector.multi_reduction <maximumf>, %18, %cst_13 [1] : vector<8x8xf32> to vector<8xf32>
    %20 = vector.shape_cast %19 : vector<8xf32> to vector<8x1xf32>
    %21 = vector.broadcast %20 : vector<8x1xf32> to vector<8x8xf32>
    %22 = arith.subf %18, %21 : vector<8x8xf32>
    %23 = math.exp %22 : vector<8x8xf32>
    %cst_14 = arith.constant dense<0.000000e+00> : vector<8xf32>
    %24 = vector.multi_reduction <add>, %23, %cst_14 [1] : vector<8x8xf32> to vector<8xf32>
    %25 = vector.shape_cast %24 : vector<8xf32> to vector<8x1xf32>
    %26 = vector.broadcast %25 : vector<8x1xf32> to vector<8x8xf32>
    %27 = arith.divf %23, %26 : vector<8x8xf32>
    %c0_15 = arith.constant 0 : index
    %c0_16 = arith.constant 0 : index
    %28 = vector.load %arg7[%c0_15, %c0_16] : memref<8x8xf32, #tpu.memory_space<vmem>>, vector<8x8xf32>
    tpu.vector_store %arg7[%c0_15, %c0_16], %27 {strides = array<i32>} : memref<8x8xf32, #tpu.memory_space<vmem>>, vector<8x8xf32>,
    return
  }
  func.func @transform_0(%arg0: i32) -> (i32, i32) {
    %c0_i32 = arith.constant 0 : i32
    %c0_i32_0 = arith.constant 0 : i32
    return %arg0, %c0_i32 : i32, i32
  }
  func.func @transform_1(%arg0: i32) -> (i32, i32) {
    %c0_i32 = arith.constant 0 : i32
    %c0_i32_0 = arith.constant 0 : i32
    return %arg0, %c0_i32 : i32, i32
  }
  func.func @transform_2(%arg0: i32) -> (i32, i32) {
    %c0_i32 = arith.constant 0 : i32
    %c0_i32_0 = arith.constant 0 : i32
    %c0_i32_1 = arith.constant 0 : i32
    return %c0_i32, %c0_i32_0 : i32, i32
  }
  func.func @transform_3(%arg0: i32) -> (i32, i32) {
    %c0_i32 = arith.constant 0 : i32
    %c0_i32_0 = arith.constant 0 : i32
    %c0_i32_1 = arith.constant 0 : i32
    return %c0_i32, %c0_i32_0 : i32, i32
  }
  func.func @transform_4(%arg0: i32) -> (i32, i32) {
    %c0_i32 = arith.constant 0 : i32
    %c0_i32_0 = arith.constant 0 : i32
    %c0_i32_1 = arith.constant 0 : i32
    return %c0_i32, %c0_i32_0 : i32, i32
  }
  func.func @transform_5(%arg0: i32) -> (i32, i32) {
    %c0_i32 = arith.constant 0 : i32
    %c0_i32_0 = arith.constant 0 : i32
    %c0_i32_1 = arith.constant 0 : i32
    return %c0_i32, %c0_i32_0 : i32, i32
  }
  func.func @transform_6(%arg0: i32) -> (i32, i32) {
    %c0_i32 = arith.constant 0 : i32
    %c0_i32_0 = arith.constant 0 : i32
    return %arg0, %c0_i32 : i32, i32
  }
}

</mosaic_0001>

<bundles_post_ra>
// kernel: tpu_custom_call.1
= control target key start
LH: loop header
LB: loop body
LE: loop exit
PB: predicated region body
PF: predicated region fallthrough
CT: control target
= control target key end

     0   :  { %s1236_s21 = smov 0   ;;  %s1447_s0 = inlined_call_operand.vmem [shape: f32[16,32], index: 0, kind: input, shape index: {}]   ;;  %s1448_s1 = inlined_call_operand.vmem [shape: f32[128,32], index: 1, kind: input, shape index: {}]   ;;  %s1449_s2 = inlined_call_operand.vmem [shape: f32[32,32], index: 2, kind: input, shape index: {}]   ;;  %s1450_s3 = inlined_call_operand.vmem [shape: f32[32,32], index: 3, kind: input, shape index: {}]   ;;  %s1451_s4 = inlined_call_operand.vmem [shape: f32[1,32], index: 4, kind: input, shape index: {}]   ;;  %s1452_s5 = inlined_call_operand.vmem [shape: f32[1,32], index: 5, kind: input, shape index: {}]   ;;  %s1453_s6 = inlined_call_operand.vmem [shape: f32[16,8], index: 6, kind: output, shape index: {}]  }
   0x1 LB: > { %s1242_s22 = sadd.s32 4294967295, %s1194_s21   ;;  %p1041_p0 = scmp.ge.s32.totalorder %s1194_s21, 1  ;;  %s1194_s21 = sphi %s1236_s21, %s16_s21  }
   0x2   : > { %p222_p1 = scmp.lt.s32.totalorder %s1194_s21, 3 }
   0x4   : > { %p223_p2 = pnand %p1041_p0, %p222_p1 }
   0x5   : > { %v270_v0 = vld [vmem:[%s1449_s2] sm:$0xff] (!%p223_p2)  ;;  %v271_v1 = vld [vmem:[%s1449_s2 + $0x8] sm:$0xff] (!%p223_p2)  ;;  %v1196_v3 = vmov (!%p223_p2), 0.0|0.0   ;;  %v272_v6 = vld [vmem:[%s1449_s2 + $0x10] sm:$0xff] (!%p223_p2)  ;;  %vm1197_vm0 = vmmov (!%p223_p2), 0   ;;  %v1198_v8 = vmov (!%p223_p2), 0.0   ;;  %v501_v25 = vlaneseq (!%p223_p2) }
   0x6   : > { %226 = sbr.rel (%p223_p2) target bundleno = 1046 (0x416), region = 44  ;;  %v363_v2 = vld [vmem:[%s1450_s3] sm:$0xff] (!%p223_p2)  ;;  %1107 = vmatprep.subr.bf16.mxu0 (!%p223_p2), %v1196_v3  ;;  %v1108_v4 = vpack.c.bf16 (!%p223_p2), %v271_v1, %v270_v0  ;;  %v364_v5 = vld [vmem:[%s1450_s3 + $0x8] sm:$0xff] (!%p223_p2)  ;;  %v273_v7 = vld [vmem:[%s1449_s2 + $0x18] sm:$0xff] (!%p223_p2)  ;;  %1084 = vmatprep.mubr.msk.f32.mxu0 (!%p223_p2), %vm1197_vm0, %v1198_v8  ;;  %p255_p3 = scmp.lt.s32.totalorder (!%p223_p2), %s1242_s22, 1  ;;  %vm281_vm1 = vcmask (!%p223_p2), 261120  }
   0x7   : > { %s1043_s11 = sshll.u32 (!%p223_p2), %s1242_s22, 3  ;;  %v1113_v9 = vpack.c.bf16 (!%p223_p2), %v364_v5, %v363_v2  ;;  %v365_v10 = vld [vmem:[%s1450_s3 + $0x10] sm:$0xff] (!%p223_p2)  ;;  %v366_v11 = vld [vmem:[%s1450_s3 + $0x18] sm:$0xff] (!%p223_p2)  ;;  %v1111_v12 = vpack.c.bf16 (!%p223_p2), %v273_v7, %v272_v6  ;;  %v1199_v23 = vmov (!%p223_p2), 1966171168   ;;  %v1294_v27 = vshrl.u32 (!%p223_p2), %v501_v25, 7 }
   0x8   : > { %p260_p4 = scmp.lt.s32.totalorder (!%p223_p2), %s1043_s11, 15  ;;  %1109 = vmatpush3.bf16.msra.mxu0 (!%p223_p2), %v1108_v4  ;;  %v1117_v13 = vpack.c.bf16 (!%p223_p2), %v366_v11, %v365_v10  ;;  %v499_v24 = vunpack.c.l.s4 (!%p223_p2), %v1199_v23  ;;  %v1046_v28 = vld [vmem:[%s1451_s4] ss:$0 sm:$0xff] (!%p223_p2)  ;;  %vm683_vm2 = vcmask (!%p223_p2), 1041409   ;;  %vm685_vm3 = vcmask (!%p223_p2), 1042434  }
   0x9   : > { %1121 = vmatprep.subr.bf16.mxu1 (!%p223_p2), %v1113_v9  ;;  %1110 = vmatprep.subr.bf16.mxu0 (!%p223_p2), %v1196_v3  ;;  %v1301_v36 = vsub.s32 (!%p223_p2), 0, %v1294_v27  ;;  %v1056_v7 = vld [vmem:[%s1452_s5] ss:$0 sm:$0xff] (!%p223_p2)  ;;  %vm687_vm4 = vcmask (!%p223_p2), 1043459   ;;  %vm689_vm5 = vcmask (!%p223_p2), 1044484   ;;  %vm691_vm6 = vcmask (!%p223_p2), 1045509  }
   0xa   : > { %1123 = vmatpush3.bf16.msra.mxu1 (!%p223_p2), %v1113_v9  ;;  %v500_v26 = vunpack.c.0.s8 (!%p223_p2), %v499_v24  ;;  %vm693_vm7 = vcmask (!%p223_p2), 1046534   ;;  %vm695_vm8 = vcmask (!%p223_p2), 1047559   ;;  %vm698_vm9 = vcmask (!%p223_p2), 64512  }
   0xb   : > { %1122 = vmatprep.subr.bf16.mxu1 (!%p223_p2), %v1117_v13 }
   0xc   : > { %1112 = vmatpush3.bf16.msra.mxu0 (!%p223_p2), %v1111_v12  ;;  %v503_v29 = vsub.s32 (!%p223_p2), %v500_v26, %v1294_v27 }
   0xd   : > { %s1455_s22 = smov (!%p255_p3, %s1242_s22), 1  ;;  %s1457_s11 = smov (!%p260_p4, %s1043_s11), 15  ;;  %1114 = vmatprep.subr.bf16.mxu0 %v1113_v9 }
   0xe   : > { %s1042_s16 = sshll.u32 %s1455_s22, 3  ;;  %s1044_s20 = sshll.u32 %s1457_s11, 3  ;;  %1124 = vmatpush3.bf16.msra.mxu1 %v1117_v13 }
   0xf   : > { %s258_s19 = scalar_lea.vmem %s1447_s0, %s1042_s16  ;;  %s263_s25 = scalar_lea.vmem %s1448_s1, %s1044_s20 }
  0x10   : > { %v269_v14 = vld [vmem:[%s258_s19] sm:$0xff]  ;;  %v357_v15 = vld [vmem:[%s263_s25 + $0x10] sm:$0xff]  ;;  %v358_v16 = vld [vmem:[%s263_s25 + $0x18] sm:$0xff]  ;;  %s268_s8 = scalar_lea.vmem %s1453_s6, %s1042_s16 }
  0x11   : > { %1085 = vmatmul.mubr.msk.f32.vlgmr.msra.gmra.mrb[0].mxu0 %vm281_vm1, %v269_v14  ;;  %1098 = vmatprep.mubr.msk.f32.mxu1 %vm281_vm1, %v357_v15  ;;  %v359_v17 = vld [vmem:[%s263_s25 + $0x20] sm:$0xff]  ;;  %v360_v19 = vld [vmem:[%s263_s25 + $0x28] sm:$0xff]  ;;  %v361_v20 = vld [vmem:[%s263_s25 + $0x30] sm:$0xff] }
  0x12   : > { %v355_v18 = vld [vmem:[%s263_s25] sm:$0xff]  ;;  %1116 = vmatpush3.bf16.msra.mxu0 %v1113_v9  ;;  %1099 = vmatmul.mubr.msk.f32.vlgmr.msra.gmra.mrb[0].mxu1 %vm281_vm1, %v358_v16  ;;  %v356_v21 = vld [vmem:[%s263_s25 + $0x8] sm:$0xff]  ;;  %v362_v22 = vld [vmem:[%s263_s25 + $0x38] sm:$0xff] }
  0x13   : > { %1095 = vmatprep.mubr.msk.f32.mxu0 %vm281_vm1, %v355_v18  ;;  %1118 = vmatprep.subr.bf16.mxu0 %v1117_v13 }
  0x14   : > { %1101 = vmatprep.mubr.msk.f32.mxu1 %vm281_vm1, %v359_v17 }
  0x16   : > { %1120 = vmatpush3.bf16.msra.mxu0 %v1117_v13  ;;  %1102 = vmatmul.mubr.msk.f32.gmra.mrb[2].mxu1 %vm281_vm1, %v360_v19 }
  0x17   : > { %1104 = vmatprep.mubr.msk.f32.mxu1 %vm281_vm1, %v361_v20 }
  0x19   : > { %1096 = vmatmul.mubr.msk.f32.vlgmr.msra.gmra.mrb[2].mxu0 %vm281_vm1, %v356_v21 }
  0x1a   : > { %1105 = vmatmul.mubr.msk.f32.gmra.mrb[4].mxu1 %vm281_vm1, %v362_v22 }
  0xe4   : > { %v351_v30 = vpop.f32.mrb[0].mxu0 }
  0xe5   : > { %v352_v31 = vadd.f32 %v1046_v28, %v351_v30  ;;  %v1086_v32 = vpop.f32.mrb[1].mxu0  ;;  %v1100_v33 = vpop.f32.mrb[0].mxu1 }
  0xe6   : > { %v467_v37 = vpop.f32.mrb[1].mxu1 }
  0xe7   : > { %v497_v34 = vcombine.high %v352_v31, %v352_v31  ;;  %v504_v35 = vrot.slane %v352_v31, %v503_v29 }
  0xe9   : > { %v511_v38 = vrot.slane %v497_v34, %v503_v29  ;;  %v512_v39 = vcombine.high %v504_v35, %v504_v35  ;;  %v520_v40 = vrot.slane %v504_v35, %v503_v29  ;;  %v1103_v41 = vpop.f32.mrb[2].mxu1  ;;  %v650_v34 = vand.u32 127, %v501_v25 }
  0xea   : > { %v477_v46 = vpop.f32.mrb[3].mxu1 }
  0xeb   : > { %v534_v42 = vrot.slane %v512_v39, %v503_v29  ;;  %v542_v43 = vcombine.high %v520_v40, %v520_v40  ;;  %v549_v44 = vrot.slane %v520_v40, %v1301_v36  ;;  %v513_v45 = vcombine.high %v511_v38, %v511_v38 }
  0xec   : > { %v1097_v47 = vpop.f32.mrb[2].mxu0  ;;  %v527_v48 = vrot.slane %v511_v38, %v503_v29 }
  0xed   : > { %v544_v49 = vcombine.high %v534_v42, %v534_v42  ;;  %v553_v50 = vrot.slane %v534_v42, %v1301_v36  ;;  %v557_v51 = vrot.slane %v542_v43, %v1301_v36  ;;  %v457_v52 = vpop.f32.mrb[3].mxu0  ;;  %v541_v53 = vrot.slane %v513_v45, %v503_v29  ;;  %v1106_v56 = vpop.f32.mrb[4].mxu1 }
  0xee   : > { %v586_v54 = vadd.f32 %v549_v44, %v457_v52  ;;  %v565_v55 = vrot.slane %v527_v48, %v1301_v36  ;;  %v543_v57 = vcombine.high %v527_v48, %v527_v48  ;;  %v487_v62 = vpop.f32.mrb[5].mxu1 }
  0xef   : > { %v561_v58 = vrot.slane %v544_v49, %v1301_v36  ;;  %v587_v59 = vadd.f32 %v1097_v47, %v553_v50  ;;  %v588_v60 = vadd.f32 %v557_v51, %v467_v37  ;;  %v569_v61 = vrot.slane %v541_v53, %v1301_v36 }
  0xf0   : > { %1140 = vtanh.f32 %v586_v54  ;;  %v590_v63 = vadd.f32 %v565_v55, %v477_v46  ;;  %v545_v0 = vcombine.high %v541_v53, %v541_v53  ;;  %v573_v1 = vrot.slane %v543_v57, %v1301_v36 }
  0xf1   : > { %v589_v2 = vadd.f32 %v1100_v33, %v561_v58  ;;  %1142 = vtanh.f32 %v587_v59  ;;  %v591_v3 = vadd.f32 %v1103_v41, %v569_v61  ;;  %v1324_v37 = vsub.s32 %v650_v34, %v1294_v27 }
  0xf2   : > { %1144 = vtanh.f32 %v588_v60  ;;  %v577_v4 = vrot.slane %v545_v0, %v1301_v36  ;;  %v592_v5 = vadd.f32 %v573_v1, %v487_v62  ;;  %v1200_v60 = vmov 0  }
  0xf3   : > { %1146 = vtanh.f32 %v589_v2  ;;  %1139 = vset.pattern.permute.xlu0 %v1200_v60  ;;  %1138 = vset.pattern.permute.xlu1 %v1200_v60  ;;  %v709_v61 = vsub.s32 1, %v1294_v27  ;;  %v713_v62 = vsub.s32 2, %v1294_v27 }
  0xf4   : > { %v593_v6 = vadd.f32 %v1106_v56, %v577_v4  ;;  %1148 = vtanh.f32 %v590_v63  ;;  %v717_v63 = vsub.s32 3, %v1294_v27  ;;  %v721_v4 = vsub.s32 4, %v1294_v27 }
  0xf5   : > { %1150 = vtanh.f32 %v591_v3 }
  0xf6   : > { %1152 = vtanh.f32 %v592_v5 }
  0xf7   : > { %1154 = vtanh.f32 %v593_v6 }
  0xfa   : > { %v1141_v8 = vpop.eup %1140 }
  0xfb   : > { %v1143_v9 = vpop.eup %1142  ;;  %v609_v10 = vmul.f32 %v1141_v8, %v1056_v7 }
  0xfc   : > { %v1145_v11 = vpop.eup %1144  ;;  %v610_v15 = vmul.f32 %v1143_v9, %v1056_v7 }
  0xfd   : > { %v1147_v12 = vpop.eup %1146  ;;  %v617_v13 = vsel %vm281_vm1, %v609_v10, 0.0  ;;  %v611_v14 = vmul.f32 %v1145_v11, %v1056_v7  ;;  %v725_v11 = vsub.s32 5, %v1294_v27 }
  0xfe   : > { %618 = vadd.xlane.f32.xlu0 %v617_v13  ;;  %v1149_v16 = vpop.eup %1148  ;;  %v612_v18 = vmul.f32 %v1147_v12, %v1056_v7  ;;  %v620_v20 = vsel %vm281_vm1, %v610_v15, 0.0  ;;  %v729_v15 = vsub.s32 6, %v1294_v27 }
  0xff   : > { %v623_v17 = vsel %vm281_vm1, %v611_v14, 0.0  ;;  %v1151_v19 = vpop.eup %1150  ;;  %v613_v21 = vmul.f32 %v1149_v16, %v1056_v7 }
 0x100   : > { %624 = vadd.xlane.f32.xlu1 %v623_v17  ;;  %v1153_v22 = vpop.eup %1152  ;;  %v626_v23 = vsel %vm281_vm1, %v612_v18, 0.0  ;;  %v614_v24 = vmul.f32 %v1151_v19, %v1056_v7  ;;  %v733_v19 = vsub.s32 7, %v1294_v27 }
 0x101   : > { %v1155_v26 = vpop.eup %1154  ;;  %v629_v28 = vsel %vm281_vm1, %v613_v21, 0.0  ;;  %v615_v29 = vmul.f32 %v1153_v22, %v1056_v7 }
 0x102   : > { %621 = vadd.xlane.f32.xlu0 %v620_v20  ;;  %v632_v30 = vsel %vm281_vm1, %v614_v24, 0.0  ;;  %v616_v31 = vmul.f32 %v1155_v26, %v1056_v7 }
 0x103   : > { %v635_v32 = vsel %vm281_vm1, %v615_v29, 0.0 }
 0x104   : > { %627 = vadd.xlane.f32.xlu1 %v626_v23  ;;  %v638_v33 = vsel %vm281_vm1, %v616_v31, 0.0 }
 0x106   : > { %630 = vadd.xlane.f32.xlu0 %v629_v28 }
 0x108   : > { %633 = vadd.xlane.f32.xlu1 %v632_v30 }
 0x10a   : > { %636 = vadd.xlane.f32.xlu0 %v635_v32 }
 0x10c   : > { %639 = vadd.xlane.f32.xlu1 %v638_v33 }
 0x18b   : > { %v619_v35 = vpop.xlane.xlu0 %618 }
 0x18c   : > { %v654_v40 = vrot.slane %v619_v35, %v1324_v37 }
 0x18d   : > { %v625_v38 = vpop.xlane.xlu1 %624 }
 0x18e   : > { %v662_v42 = vrot.slane %v625_v38, %v1324_v37 }
 0x18f   : > { %v622_v39 = vpop.xlane.xlu0 %621 }
 0x190   : > { %v658_v41 = vrot.slane %v622_v39, %v1324_v37 }
 0x191   : > { %v628_v43 = vpop.xlane.xlu1 %627 }
 0x192   : > { %v684_v44 = vsel %vm683_vm2, %v658_v41, %v654_v40  ;;  %v666_v25 = vrot.slane %v628_v43, %v1324_v37 }
 0x193   : > { %v686_v45 = vsel %vm685_vm3, %v662_v42, %v684_v44  ;;  %v631_v46 = vpop.xlane.xlu0 %630 }
 0x194   : > { %v688_v47 = vsel %vm687_vm4, %v666_v25, %v686_v45  ;;  %v670_v48 = vrot.slane %v631_v46, %v1324_v37 }
 0x195   : > { %v634_v49 = vpop.xlane.xlu1 %633 }
 0x196   : > { %v690_v50 = vsel %vm689_vm5, %v670_v48, %v688_v47  ;;  %v674_v51 = vrot.slane %v634_v49, %v1324_v37 }
 0x197   : > { %v637_v52 = vpop.xlane.xlu0 %636 }
 0x198   : > { %v678_v53 = vrot.slane %v637_v52, %v1324_v37  ;;  %v692_v55 = vsel %vm691_vm6, %v674_v51, %v690_v50 }
 0x199   : > { %v640_v54 = vpop.xlane.xlu1 %639 }
 0x19a   : > { %v682_v56 = vrot.slane %v640_v54, %v1324_v37  ;;  %v694_v57 = vsel %vm693_vm7, %v678_v53, %v692_v55 }
 0x19c   : > { %v696_v58 = vsel %vm695_vm8, %v682_v56, %v694_v57 }
 0x19d   : > { %v699_v59 = vsel %vm698_vm9, %v696_v58, -inf }
 0x19e   : > { %700 = vmax.xlane.f32.xlu0 %v699_v59 }
 0x22b   : > { %v701_v0 = vpop.xlane.xlu0 %700 }
 0x22c   : > { %v706_v1 = vrot.slane %v701_v0, %v1301_v36  ;;  %v710_v2 = vrot.slane %v701_v0, %v709_v61  ;;  %v714_v3 = vrot.slane %v701_v0, %v713_v62  ;;  %v718_v5 = vrot.slane %v701_v0, %v717_v63 }
 0x22d   : > { %v722_v12 = vrot.slane %v701_v0, %v721_v4  ;;  %v726_v16 = vrot.slane %v701_v0, %v725_v11  ;;  %v730_v20 = vrot.slane %v701_v0, %v729_v15  ;;  %v734_v26 = vrot.slane %v701_v0, %v733_v19 }
 0x22e   : > { %v743_v6 = vsub.f32 %v619_v35, %v706_v1  ;;  %v744_v7 = vsub.f32 %v622_v39, %v710_v2  ;;  %v745_v8 = vsub.f32 %v625_v38, %v714_v3  ;;  %v746_v13 = vsub.f32 %v628_v43, %v718_v5 }
 0x22f   : > { %v747_v17 = vsub.f32 %v631_v46, %v722_v12  ;;  %v748_v21 = vsub.f32 %v634_v49, %v726_v16  ;;  %v749_v28 = vsub.f32 %v637_v52, %v730_v20  ;;  %v750_v31 = vsub.f32 %v640_v54, %v734_v26 }
 0x230   : > { %v751_v9 = vmul.f32 1.442695, %v743_v6  ;;  %v753_v10 = vmul.f32 1.442695, %v744_v7  ;;  %v755_v14 = vmul.f32 1.442695, %v745_v8 }
 0x231   : > { %v757_v18 = vmul.f32 1.442695, %v746_v13  ;;  %v759_v22 = vmul.f32 1.442695, %v747_v17  ;;  %v761_v29 = vmul.f32 1.442695, %v748_v21 }
 0x232   : > { %1156 = vpow2.f32 %v751_v9  ;;  %v763_v32 = vmul.f32 1.442695, %v749_v28  ;;  %v765_v34 = vmul.f32 1.442695, %v750_v31 }
 0x233   : > { %1158 = vpow2.f32 %v753_v10 }
 0x234   : > { %1160 = vpow2.f32 %v755_v14 }
 0x235   : > { %1162 = vpow2.f32 %v757_v18 }
 0x236   : > { %1164 = vpow2.f32 %v759_v22 }
 0x237   : > { %1166 = vpow2.f32 %v761_v29 }
 0x238   : > { %1168 = vpow2.f32 %v763_v32 }
 0x239   : > { %1170 = vpow2.f32 %v765_v34 }
 0x23c   : > { %v1157_v23 = vpop.eup %1156 }
 0x23d   : > { %v1362_v24 = vpop.eup %1158  ;;  %776 = vperm.xlu1 %1138, %v1157_v23  }
 0x23e   : > { %779 = vperm.xlu0 %1139, %v1362_v24   ;;  %v1367_v30 = vpop.eup %1160 }
 0x23f   : > { %v1370_v33 = vpop.eup %1162 }
 0x240   : > { %v1373_v35 = vpop.eup %1164 }
 0x241   : > { %782 = vperm.xlu1 %1138, %v1367_v30   ;;  %v1376_v38 = vpop.eup %1166 }
 0x242   : > { %v1379_v39 = vpop.eup %1168 }
 0x243   : > { %v1382_v40 = vpop.eup %1170 }
 0x245   : > { %785 = vperm.xlu1 %1138, %v1370_v33  }
 0x249   : > { %788 = vperm.xlu1 %1138, %v1373_v35  }
 0x24d   : > { %791 = vperm.xlu1 %1138, %v1376_v38  }
 0x251   : > { %794 = vperm.xlu1 %1138, %v1379_v39  }
 0x255   : > { %797 = vperm.xlu1 %1138, %v1382_v40  }
 0x2bc   : > { %v777_v41 = vpop.permute.xlu1 %776 }
 0x2bd   : > { %v780_v25 = vpop.permute.xlu0 %779  ;;  %v802_v47 = vrot.slane %v777_v41, %v1324_v37 }
 0x2be   : > { %v806_v46 = vrot.slane %v780_v25, %v1324_v37 }
 0x2c0   : > { %v783_v42 = vpop.permute.xlu1 %782  ;;  %v831_v52 = vsel %vm683_vm2, %v806_v46, %v802_v47 }
 0x2c1   : > { %v810_v48 = vrot.slane %v783_v42, %v1324_v37 }
 0x2c3   : > { %v832_v54 = vsel %vm685_vm3, %v810_v48, %v831_v52 }
 0x2c4   : > { %v786_v43 = vpop.permute.xlu1 %785 }
 0x2c5   : > { %v814_v49 = vrot.slane %v786_v43, %v1324_v37 }
 0x2c7   : > { %v833_v56 = vsel %vm687_vm4, %v814_v49, %v832_v54 }
 0x2c8   : > { %v789_v44 = vpop.permute.xlu1 %788 }
 0x2c9   : > { %v818_v50 = vrot.slane %v789_v44, %v1324_v37 }
 0x2cb   : > { %v834_v57 = vsel %vm689_vm5, %v818_v50, %v833_v56 }
 0x2cc   : > { %v792_v45 = vpop.permute.xlu1 %791 }
 0x2cd   : > { %v822_v53 = vrot.slane %v792_v45, %v1324_v37 }
 0x2cf   : > { %v835_v59 = vsel %vm691_vm6, %v822_v53, %v834_v57 }
 0x2d0   : > { %v795_v51 = vpop.permute.xlu1 %794 }
 0x2d1   : > { %v826_v55 = vrot.slane %v795_v51, %v1324_v37 }
 0x2d3   : > { %v836_v0 = vsel %vm693_vm7, %v826_v55, %v835_v59 }
 0x2d4   : > { %v798_v58 = vpop.permute.xlu1 %797 }
 0x2d5   : > { %v830_v60 = vrot.slane %v798_v58, %v1324_v37 }
 0x2d7   : > { %v837_v1 = vsel %vm695_vm8, %v830_v60, %v836_v0 }
 0x2d8   : > { %v839_v2 = vsel %vm698_vm9, %v837_v1, 0.0 }
 0x2d9   : > { %840 = vadd.xlane.f32.xlu1 %v839_v2 }
 0x366   : > { %v841_v3 = vpop.xlane.xlu1 %840 }
 0x367   : > { %v846_v5 = vrot.slane %v841_v3, %v1301_v36  ;;  %v850_v6 = vrot.slane %v841_v3, %v709_v61  ;;  %v854_v7 = vrot.slane %v841_v3, %v713_v62  ;;  %v858_v8 = vrot.slane %v841_v3, %v717_v63 }
 0x368   : > { %v862_v10 = vrot.slane %v841_v3, %v721_v4  ;;  %v866_v36 = vrot.slane %v841_v3, %v725_v11  ;;  %v870_v62 = vrot.slane %v841_v3, %v729_v15  ;;  %v874_v4 = vrot.slane %v841_v3, %v733_v19 }
 0x369   : > { %1172 = vrcp.f32 %v846_v5 }
 0x36a   : > { %1174 = vrcp.f32 %v850_v6 }
 0x36b   : > { %1176 = vrcp.f32 %v854_v7 }
 0x36c   : > { %1178 = vrcp.f32 %v858_v8 }
 0x36d   : > { %1180 = vrcp.f32 %v862_v10 }
 0x36e   : > { %1182 = vrcp.f32 %v866_v36 }
 0x36f   : > { %1184 = vrcp.f32 %v870_v62 }
 0x370   : > { %1186 = vrcp.f32 %v874_v4 }
 0x373   : > { %v1173_v9 = vpop.eup %1172 }
 0x374   : > { %v884_v12 = vmul.f32 %v1173_v9, %v1157_v23  ;;  %v1175_v13 = vpop.eup %1174 }
 0x375   : > { %v886_v61 = vmul.f32 %v1175_v13, %v1362_v24  ;;  %v1177_v14 = vpop.eup %1176 }
 0x376   : > { %908 = vperm.xlu0 %1139, %v884_v12   ;;  %v888_v63 = vmul.f32 %v1177_v14, %v1367_v30  ;;  %v1179_v16 = vpop.eup %1178 }
 0x377   : > { %v890_v17 = vmul.f32 %v1179_v16, %v1370_v33  ;;  %v1181_v18 = vpop.eup %1180 }
 0x378   : > { %v892_v11 = vmul.f32 %v1181_v18, %v1373_v35  ;;  %v1183_v20 = vpop.eup %1182 }
 0x379   : > { %v894_v21 = vmul.f32 %v1183_v20, %v1376_v38  ;;  %v1185_v15 = vpop.eup %1184 }
 0x37a   : > { %911 = vperm.xlu0 %1139, %v886_v61   ;;  %v896_v22 = vmul.f32 %v1185_v15, %v1379_v39  ;;  %v1187_v23 = vpop.eup %1186 }
 0x37b   : > { %v898_v27 = vmul.f32 %v1187_v23, %v1382_v40 }
 0x37e   : > { %914 = vperm.xlu0 %1139, %v888_v63  }
 0x382   : > { %917 = vperm.xlu0 %1139, %v890_v17  }
 0x386   : > { %920 = vperm.xlu0 %1139, %v892_v11  }
 0x38a   : > { %923 = vperm.xlu0 %1139, %v894_v21  }
 0x38e   : > { %926 = vperm.xlu0 %1139, %v896_v22  }
 0x392   : > { %929 = vperm.xlu0 %1139, %v898_v27  }
 0x3f5   : > { %v909_v19 = vpop.permute.xlu0 %908 }
 0x3f6   : > { %v934_v33 = vrot.slane %v909_v19, %v1324_v37 }
 0x3f9   : > { %v912_v24 = vpop.permute.xlu0 %911 }
 0x3fa   : > { %v938_v31 = vrot.slane %v912_v24, %v1324_v37 }
 0x3fc   : > { %v963_v39 = vsel %vm683_vm2, %v938_v31, %v934_v33 }
 0x3fd   : > { %v915_v26 = vpop.permute.xlu0 %914 }
 0x3fe   : > { %v942_v32 = vrot.slane %v915_v26, %v1324_v37 }
 0x400   : > { %v964_v41 = vsel %vm685_vm3, %v942_v32, %v963_v39 }
 0x401   : > { %v918_v28 = vpop.permute.xlu0 %917 }
 0x402   : > { %v946_v34 = vrot.slane %v918_v28, %v1324_v37 }
 0x404   : > { %v965_v43 = vsel %vm687_vm4, %v946_v34, %v964_v41 }
 0x405   : > { %v921_v29 = vpop.permute.xlu0 %920 }
 0x406   : > { %v950_v35 = vrot.slane %v921_v29, %v1324_v37 }
 0x408   : > { %v966_v44 = vsel %vm689_vm5, %v950_v35, %v965_v43 }
 0x409   : > { %v924_v30 = vpop.permute.xlu0 %923 }
 0x40a   : > { %v954_v40 = vrot.slane %v924_v30, %v1324_v37 }
 0x40c   : > { %v967_v45 = vsel %vm691_vm6, %v954_v40, %v966_v44 }
 0x40d   : > { %v927_v38 = vpop.permute.xlu0 %926 }
 0x40e   : > { %v958_v42 = vrot.slane %v927_v38, %v1324_v37 }
 0x410   : > { %v968_v47 = vsel %vm693_vm7, %v958_v42, %v967_v45 }
 0x411   : > { %v930_v25 = vpop.permute.xlu0 %929 }
 0x412   : > { %v962_v46 = vrot.slane %v930_v25, %v1324_v37 }
 0x414   : > { %v969_v48 = vsel %vm695_vm8, %v962_v46, %v968_v47 }
 0x415   : > { %971 = vst.msk [vmem:[%s268_s8] sm:$0xff] %vm698_vm9, %v969_v48 }
 0x416 PF: > { %s16_s21 = sadd.s32 1, %s1194_s21  }
 0x417   : > { %p13_p5 = scmp.ge.s32.totalorder %s16_s21, 4  }
 0x419   :  { %15 = sbr.rel (!%p13_p5) target bundleno = 1 (0x1), region = 77 }

</bundles_post_ra>
